<compile_context>
chip_gen: v7x
topology: tpu7x:2x2x1
jax: 0.10.0
libtpu: 0.0.40
codegen_flags: <defaults>
</compile_context>

<pallas_src>
import math

import jax
import jax.numpy as jnp
from jax.experimental import pallas as pl
from jax.experimental.pallas import tpu as pltpu


def _round_up(x: int, m: int) -> int:
    return ((x + m - 1) // m) * m


def _sine_encoding_kernel(coord_ref, sel_ref, shift_ref, out_ref):
    # coord_ref : (tm, K)  f32  -- k packed logical rows x D coords, zero-padded to K
    # sel_ref   : (K, W)   f32  -- sel[c, c*F2 + f] = freq[f]; padded rows are zero
    # shift_ref : (1, W)   f32  -- shifts tiled across the packed width
    # out_ref   : (tm, W)       -- W is a multiple of 128 (or the full width)
    #
    # Coordinate expansion + frequency multiply run on the otherwise-idle MXU;
    # the VPU only sees one add plus the sin polynomial per output element.
    arg = jnp.dot(coord_ref[...], sel_ref[...],
                  preferred_element_type=jnp.float32)
    out_ref[...] = jnp.sin(arg + shift_ref[...]).astype(out_ref.dtype)


def make_sine_encoding_params(n_frequencies: int):
    """Deterministic buffers identical to the PyTorch __init__ (length 2*nf)."""
    freqs, shifts = [], []
    for i in range(1, n_frequencies + 1):
        fi = 1.0 / (1000.0 ** (2.0 * i / n_frequencies))
        freqs += [fi, fi]
        shifts += [0.0, math.pi / 2.0]
    return (jnp.asarray(freqs, dtype=jnp.float32),
            jnp.asarray(shifts, dtype=jnp.float32))


def _vmem_limit_bytes() -> int:
    # Generation-aware scoped-VMEM budget: ~3/4 of physical, capped at 96 MiB.
    # (v5e/v6e: 128 MiB physical -> 96 MiB;  v7x: 64 MiB physical -> 48 MiB.)
    try:
        cap = int(pltpu.get_tpu_info().vmem_capacity_bytes)
    except Exception:
        cap = 64 << 20
    return int(min(cap * 3 // 4, 96 << 20))


def _min_grid_steps() -> int:
    # v7x shards the single "parallel" axis across two TensorCores -> give each
    # at least two steps.  Single-TC chips only need >=2 steps for pipelining.
    try:
        kind = jax.devices()[0].device_kind.lower()
    except Exception:
        kind = ""
    return 4 if ("v7" in kind or "tpu7" in kind) else 2


def _choose_tile_rows(rows, width, out_dtype, vmem_limit, requested=None) -> int:
    out_bytes = jnp.dtype(out_dtype).itemsize
    rmult = 16 if out_bytes < 4 else 8          # unmasked sublane-packed stores
    if requested is not None:
        return max(rmult, (int(requested) // rmult) * rmult)
    # Large output blocks (~6-8 MiB; 2x that double-buffered) amortize the
    # ~0.35 us per-grid-step overhead while leaving room for in-kernel f32
    # intermediates inside the scoped-VMEM limit on every generation.
    block_budget = min(8 << 20, vmem_limit // 8)
    budget_rows = max(rmult, block_budget // (width * out_bytes))
    cap_rows = _round_up(pl.cdiv(rows, _min_grid_steps()), rmult)
    tile = min(budget_rows, cap_rows)
    return max(rmult, (tile // rmult) * rmult)


def sine_encoding(coordinates, frequencies, shifts, *, tm=None,
                  out_dtype=jnp.float32):
    """coordinates: (..., D) -> (..., D * 2*n_frequencies); matches
    torch.sin((coords[..., None] * frequencies + shifts).flatten(-2)).
    out_dtype=jnp.bfloat16 halves HBM write traffic (useful on v5e)."""
    coordinates = jnp.asarray(coordinates, dtype=jnp.float32)
    *batch, D = coordinates.shape
    N = math.prod(batch) if batch else 1
    coords2d = coordinates.reshape(N, D)

    freq = jnp.asarray(frequencies, dtype=jnp.float32).reshape(-1)
    shift = jnp.asarray(shifts, dtype=jnp.float32).reshape(-1)
    F2 = freq.shape[0]
    width0 = D * F2

    # Pack k logical rows per kernel row so the output block width is a multiple
    # of 128 lanes (unmasked stores).  Skip the packing for wide widths, where
    # only the final vreg per row would be masked (cheaper than padding N).
    if width0 % 128 == 0 or width0 >= 512:
        k = 1
    else:
        k = 128 // math.gcd(width0, 128)
    W = k * width0
    kD = k * D

    # Pad N only up to a multiple of k (<= k-1 rows).  When N % k == 0 the whole
    # pre/post reshape chain is layout-only (no extra HBM pass).
    n_pad = _round_up(N, k)
    if n_pad != N:
        coords2d = jnp.pad(coords2d, ((0, n_pad - N), (0, 0)))
    rows = n_pad // k
    coords_packed = coords2d.reshape(rows, kD)

    # Pad the contraction dim to a sublane-friendly multiple of 8 for the MXU.
    K = max(8, _round_up(kD, 8))
    if K != kD:
        coords_packed = jnp.pad(coords_packed, ((0, 0), (0, K - kD)))

    # Block-diagonal selection/frequency matrix: sel[c, c*F2 + f] = freq[f].
    sel = (jnp.eye(kD, dtype=jnp.float32)[:, :, None]
           * freq[None, None, :]).reshape(kD, W)
    if K != kD:
        sel = jnp.concatenate([sel, jnp.zeros((K - kD, W), jnp.float32)], axis=0)
    shift_full = jnp.tile(shift, kD)[None, :]                        # (1, W)

    vmem_limit = _vmem_limit_bytes()
    tile_rows = _choose_tile_rows(rows, W, out_dtype, vmem_limit, tm)
    grid = (pl.cdiv(rows, tile_rows),)          # ragged final block handled by Pallas

    out = pl.pallas_call(
        _sine_encoding_kernel,
        out_shape=jax.ShapeDtypeStruct((rows, W), out_dtype),
        grid_spec=pl.GridSpec(
            grid=grid,
            in_specs=[
                pl.BlockSpec((tile_rows, K), lambda i: (i, 0)),
                pl.BlockSpec((K, W), lambda i: (0, 0)),
                pl.BlockSpec((1, W), lambda i: (0, 0)),
            ],
            out_specs=pl.BlockSpec((tile_rows, W), lambda i: (i, 0)),
        ),
        compiler_params=pltpu.CompilerParams(
            dimension_semantics=("parallel",),
            vmem_limit_bytes=vmem_limit,
        ),
    )(coords_packed, sel, shift_full)

    out = out.reshape(n_pad, width0)
    if n_pad != N:
        out = out[:N]
    return out.reshape(*batch, width0)


def sine_encoding_ref(coordinates, frequencies, shifts):
    # Pure-JAX reference mirroring the torch forward exactly.
    emb = jnp.sin(coordinates[..., None] * frequencies + shifts)     # (..., D, F2)
    return emb.reshape(*coordinates.shape[:-1], -1)                  # (..., D*F2)


if __name__ == "__main__":
    key = jax.random.PRNGKey(0)
    k1, k2, k3 = jax.random.split(key, 3)

    def check(coords, nf, tol, tm=None):
        freq, shift = make_sine_encoding_params(nf)
        out = jax.block_until_ready(sine_encoding(coords, freq, shift, tm=tm))
        ref = sine_encoding_ref(coords, freq, shift)
        want_shape = coords.shape[:-1] + (coords.shape[-1] * 2 * nf,)
        assert out.shape == want_shape, (out.shape, want_shape)
        # Tolerance covers multi-pass f32 MXU expansion; any layout/frequency
        # ordering bug would produce O(1) errors.
        err = float(jnp.max(jnp.abs(out.astype(jnp.float32) - ref)))
        assert err < tol, err

    # Case 1: small batched input consistent with the module (batch=2, seq=8,
    # D=2, nf=8) -> k=4 row packing (W=128), single grid step.
    coords1 = jax.random.uniform(k1, (2, 8, 2), jnp.float32, -100.0, 100.0)
    check(coords1, 8, 5e-4)

    # Case 2: larger N with k=2 packing; N % k == 0 -> copy-free epilogue.
    coords2 = jax.random.uniform(k2, (1000, 2), jnp.float32, -100.0, 100.0)
    check(coords2, 16, 5e-4)

    # Case 3: N not divisible by k plus a forced small tile -> multi-step grid
    # with a ragged final block and the padded [:N] epilogue path.
    coords3 = jax.random.uniform(k3, (101, 2), jnp.float32, -100.0, 100.0)
    check(coords3, 8, 5e-4, tm=16)

    print("KERNEL_OK")
</pallas_src>

<mosaic_0001>
module attributes {stable_mosaic.version = 11 : i64} {
  func.func @_sine_encoding_kernel(%arg0: i32, %arg1: memref<8x8xf32, #tpu.memory_space<vmem>>, %arg2: memref<8x128xf32, #tpu.memory_space<vmem>>, %arg3: memref<1x128xf32, #tpu.memory_space<vmem>>, %arg4: memref<8x128xf32, #tpu.memory_space<vmem>>) attributes {dimension_semantics = [#tpu.dimension_semantics<parallel>], iteration_bounds = array<i64: 1>, scalar_prefetch = 0 : i64, scratch_operands = 0 : i64, tpu.core_type = #tpu.core_type<tc>, window_params = [{transform_indices = @transform_0, window_bounds = array<i64: 8, 8>}, {pipeline_mode = #tpu.pipeline_mode<synchronous>, transform_indices = @transform_1, window_bounds = array<i64: 8, 128>}, {pipeline_mode = #tpu.pipeline_mode<synchronous>, transform_indices = @transform_2, window_bounds = array<i64: 1, 128>}, {transform_indices = @transform_3, window_bounds = array<i64: 8, 128>}]} {
    %c0 = arith.constant 0 : index
    %c0_0 = arith.constant 0 : index
    %0 = vector.load %arg1[%c0, %c0_0] : memref<8x8xf32, #tpu.memory_space<vmem>>, vector<8x8xf32>
    %c0_1 = arith.constant 0 : index
    %c0_2 = arith.constant 0 : index
    %1 = vector.load %arg2[%c0_1, %c0_2] : memref<8x128xf32, #tpu.memory_space<vmem>>, vector<8x128xf32>
    %cst = arith.constant dense<0.000000e+00> : vector<8x128xf32>
    %2 = tpu.matmul %0, %1, %cst {dimension_numbers = #tpu.dot_dimension_numbers<[1], [0], [0], [1], [0, 0, 1, 1], [], []>} : vector<8x8xf32>, vector<8x128xf32>, vector<8x128xf32> -> vector<8x128xf32>
    %c0_3 = arith.constant 0 : index
    %c0_4 = arith.constant 0 : index
    %3 = vector.load %arg3[%c0_3, %c0_4] : memref<1x128xf32, #tpu.memory_space<vmem>>, vector<1x128xf32>
    %4 = vector.broadcast %3 : vector<1x128xf32> to vector<8x128xf32>
    %5 = arith.addf %2, %4 : vector<8x128xf32>
    %6 = math.sin %5 : vector<8x128xf32>
    %c0_5 = arith.constant 0 : index
    %c0_6 = arith.constant 0 : index
    %7 = vector.load %arg4[%c0_5, %c0_6] : memref<8x128xf32, #tpu.memory_space<vmem>>, vector<8x128xf32>
    tpu.vector_store %arg4[%c0_5, %c0_6], %6 {strides = array<i32>} : memref<8x128xf32, #tpu.memory_space<vmem>>, vector<8x128xf32>,
    return
  }
  func.func @transform_0(%arg0: i32) -> (i32, i32) {
    %c0_i32 = arith.constant 0 : i32
    %c0_i32_0 = arith.constant 0 : i32
    return %arg0, %c0_i32 : i32, i32
  }
  func.func @transform_1(%arg0: i32) -> (i32, i32) {
    %c0_i32 = arith.constant 0 : i32
    %c0_i32_0 = arith.constant 0 : i32
    %c0_i32_1 = arith.constant 0 : i32
    return %c0_i32, %c0_i32_0 : i32, i32
  }
  func.func @transform_2(%arg0: i32) -> (i32, i32) {
    %c0_i32 = arith.constant 0 : i32
    %c0_i32_0 = arith.constant 0 : i32
    %c0_i32_1 = arith.constant 0 : i32
    return %c0_i32, %c0_i32_0 : i32, i32
  }
  func.func @transform_3(%arg0: i32) -> (i32, i32) {
    %c0_i32 = arith.constant 0 : i32
    %c0_i32_0 = arith.constant 0 : i32
    return %arg0, %c0_i32 : i32, i32
  }
}

</mosaic_0001>

<bundles_post_ra>
// kernel: tpu_custom_call.1
= control target key start
LH: loop header
LB: loop body
LE: loop exit
PB: predicated region body
PF: predicated region fallthrough
CT: control target
= control target key end

     0   :  { %8 = vsyncpa [#allocation3], 0  ;;  %s452_s0 = inlined_call_operand.hbm [shape: f32[4,8], index: 0, kind: input, shape index: {}]   ;;  %s453_s1 = inlined_call_operand.hbm [shape: f32[8,128], index: 1, kind: input, shape index: {}]   ;;  %s454_s2 = inlined_call_operand.vmem [shape: f32[1,128], index: 2, kind: input, shape index: {}]   ;;  %s455_s3 = inlined_call_operand.hbm [shape: f32[4,128], index: 3, kind: output, shape index: {}]  }
   0x1   :  { %9 = vsyncpa [#allocation6], 0 }
   0x2   :  { %10 = vsyncpa [#allocation4], 0 }
   0x3   :  { %15 = vsyncadd [#allocation3], 64  ;;  %s353_s12 = smov [#allocation2]   ;;  %s281_s16 = scalar_lea.hbm %s452_s0, 64 }
   0x4   :  { %s16_s13 = sshll.u32 %s353_s12, 4  ;;  %p282_p0 = scmp.ne.s32.totalorder %s452_s0, %s281_s16  ;;  %s17_s13 = int_to_ptr.vmem [resolvable:$true] %s16_s13 }
   0x5   :  { %p285_p1 = scmp.lt.u32.totalorder %s281_s16, %s452_s0 }
   0x7   :  { %p287_p2 = pnand %p285_p1, %p282_p0 }
   0x9   :  { %290 = shalt.err (!%p287_p2)
}
   0xa   :  { %s291_s21 = scalar_lea.vmem %s17_s13, 64  ;;  %s295_s22 = scalar_lea.vmem %s17_s13, 128 }
   0xb   :  { %p292_p3 = scmp.ne.s32.totalorder %s17_s13, %s291_s21  ;;  %p296_p4 = scmp.lt.s32.totalorder %s17_s13, %s17_s13 }
   0xc   :  { %p297_p5 = scmp.lt.s32.totalorder %s295_s22, %s291_s21 }
   0xe   :  { %p298_p6 = por %p297_p5, %p296_p4 }
  0x10   :  { %p299_p7 = pnand %p298_p6, %p292_p3 }
  0x12   :  { %302 = shalt.err (!%p299_p7)
}
  0x13   :  { %s354_s23 = smov 64   ;;  %s355_s24 = smov 4  }
  0x14   :  { %22 = dma.hbm_to_vmem [thread:$0]  %s452_s0, 64, %s17_s13, [#allocation3], %s354_s23, %s354_s23, %s355_s24  }
  0x15   :  { %s356_s27 = smov [#allocation5]   ;;  %s303_s4 = scalar_lea.hbm %s453_s1, 128 }
  0x16   :  { %s29_s28 = sshll.u32 %s356_s27, 4  ;;  %p304_p8 = scmp.ne.s32.totalorder %s453_s1, %s303_s4  ;;  %s30_s28 = int_to_ptr.vmem [resolvable:$true] %s29_s28 }
  0x17   :  { %p307_p9 = scmp.lt.u32.totalorder %s303_s4, %s453_s1 }
  0x19   :  { %p309_p10 = pnand %p307_p9, %p304_p8 }
  0x1b   :  { %312 = shalt.err (!%p309_p10)
}
  0x1c   :  { %s313_s9 = scalar_lea.vmem %s30_s28, 128  ;;  %p318_p12 = scmp.lt.s32.totalorder %s30_s28, %s30_s28 }
  0x1d   :  { %p314_p11 = scmp.ne.s32.totalorder %s30_s28, %s313_s9  ;;  %p319_p13 = scmp.lt.s32.totalorder %s313_s9, %s313_s9 }
  0x1f   :  { %p320_p0 = por %p319_p13, %p318_p12 }
  0x21   :  { %p321_p1 = pnand %p320_p0, %p314_p11 }
  0x23   :  { %324 = shalt.err (!%p321_p1)
}
  0x24   :  { %32 = dma.hbm_to_vmem [thread:$0]  %s453_s1, 128, %s30_s28, [#allocation6]  }
  0x25   :  { %347 = dma.done.wait [#allocation3], 128  }
  0x26   :  { %348 = vsyncadd [#allocation3], 4294967168 }
  0x27   :  { %349 = dma.done.wait [#allocation6], 128  }
  0x28   :  { %350 = vsyncadd [#allocation6], 4294967168  ;;  %v357_v0 = vmov 0.0   ;;  %vm358_vm0 = vmmov 0   ;;  %vm50_vm1 = vcmask 64512   ;;  %v42_v1 = vld [vmem:[#allocation5] sm:$0xff] }
  0x29   :  { %255 = vmatprep.subr.mxu0 %v357_v0  ;;  %257 = vmatprep.mubr.msk.f32.mxu0 %vm358_vm0, %v357_v0  ;;  %v41_v2 = vld [vmem:[#allocation2] sm:$0xff]  ;;  %v359_v17 = vmov 683565275   ;;  %v360_v19 = vmov 2475754826  }
  0x2a   :  { %256 = vmatpush3.msra.mxu0 %v42_v1  ;;  %v247_v3 = vld [vmem:[%s454_s2] ss:$0 sm:$0xff]  ;;  %v361_v22 = vmov 2131351028   ;;  %v362_v25 = vmov 2102212464  }
  0x2b   :  { %258 = vmatmul.mubr.msk.f32.vlgmr.msra.gmra.mrb[0].mxu0 %vm50_vm1, %v41_v2  ;;  %v363_v28 = vmov 920167782   ;;  %v364_v31 = vmov 1326507024  }
  0xfe   :  { %v120_v4 = vpop.f32.mrb[0].mxu0 }
  0xff   :  { %v416_v5 = vadd.f32 %v247_v3, %v120_v4  ;;  %v259_v6 = vpop.f32.mrb[1].mxu0 }
 0x101   :  { %v127_v7 = vand.u32 2139095040, %v416_v5  ;;  %v124_v11 = vand.u32 2147483647, %v416_v5  ;;  %vm126_vm9 = vcmp.lt.s32.totalorder %v416_v5, 0  ;;  %vm216_vm14 = vweird.f32 %v416_v5 }
 0x103   :  { %v128_v8 = vshrl.u32 %v127_v7, 23  ;;  %v131_v14 = vand.u32 8388607, %v124_v11  ;;  %vm125_vm10 = vcmp.le.f32.partialorder %v124_v11, 0.7853982 }
 0x105   :  { %v249_v9 = vadd.s32 4294967169, %v128_v8  ;;  %v132_v33 = vor.u32 8388608, %v131_v14 }
 0x107   :  { %v134_v10 = vadd.s32 1, %v249_v9  ;;  %v172_v47 = vshll.u32 %v132_v33, 8 }
 0x109   :  { %vm135_vm2 = vcmp.gt.s32.totalorder %v134_v10, 0 }
 0x10a   :  { %v136_v12 = vsel %vm135_vm2, %v134_v10, 0 }
 0x10b   :  { %v138_v13 = vand.u32 31, %v136_v12  ;;  %v137_v16 = vshrl.u32 %v136_v12, 5 }
 0x10d   :  { %v139_v15 = vsub.s32 32, %v138_v13  ;;  %v141_v18 = vshll.u32 %v359_v17, %v138_v13  ;;  %v144_v20 = vshll.u32 %v360_v19, %v138_v13  ;;  %v147_v24 = vshll.u32 %v361_v22, %v138_v13 }
 0x10e   :  { %v150_v27 = vshll.u32 %v362_v25, %v138_v13  ;;  %v153_v30 = vshll.u32 %v363_v28, %v138_v13  ;;  %vm156_vm3 = vcmp.lt.s32.totalorder %v137_v16, 1  ;;  %vm159_vm4 = vcmp.lt.s32.totalorder %v137_v16, 4 }
 0x10f   :  { %v142_v21 = vshrl.u32 %v360_v19, %v139_v15  ;;  %v145_v23 = vshrl.u32 %v361_v22, %v139_v15  ;;  %v148_v26 = vshrl.u32 %v362_v25, %v139_v15  ;;  %v151_v29 = vshrl.u32 %v363_v28, %v139_v15 }
 0x110   :  { %v154_v32 = vshrl.u32 %v364_v31, %v139_v15  ;;  %v140_v42 = vshrl.u32 %v359_v17, %v139_v15  ;;  %vm158_vm5 = vcmp.lt.s32.totalorder %v137_v16, 3  ;;  %vm157_vm6 = vcmp.lt.s32.totalorder %v137_v16, 2 }
 0x111   :  { %v143_v34 = vor.u32 %v142_v21, %v141_v18  ;;  %v146_v35 = vor.u32 %v145_v23, %v144_v20  ;;  %v149_v36 = vor.u32 %v148_v26, %v147_v24  ;;  %v152_v37 = vor.u32 %v151_v29, %v150_v27 }
 0x112   :  { %v155_v38 = vor.u32 %v154_v32, %v153_v30 }
 0x113   :  { %v161_v39 = vsel %vm159_vm4, %v149_v36, 2102212464  ;;  %v164_v40 = vsel %vm156_vm3, %v143_v34, %v146_v35  ;;  %v168_v41 = vsel %vm156_vm3, %v146_v35, %v149_v36  ;;  %v165_v43 = vsel %vm159_vm4, %v152_v37, 920167782 }
 0x114   :  { %v169_v44 = vsel %vm159_vm4, %v155_v38, 1326507024  ;;  %v166_v45 = vsel %vm158_vm5, %v149_v36, %v165_v43  ;;  %v160_v48 = vsel %vm156_vm3, %v140_v42, %v143_v34  ;;  %v162_v49 = vsel %vm158_vm5, %v146_v35, %v161_v39 }
 0x115   :  { %v170_v46 = vsel %vm158_vm5, %v152_v37, %v169_v44  ;;  %v167_v50 = vsel %vm157_vm6, %v164_v40, %v166_v45  ;;  %v163_v56 = vsel %vm157_vm6, %v160_v48, %v162_v49 }
 0x116   :  { %v171_v51 = vsel %vm157_vm6, %v168_v41, %v170_v46  ;;  %v425_v54 = vmul.u32.u64.low %v172_v47, %v167_v50  ;;  %v426_v55 = vmul.u32.u64.high %v172_v47, %v167_v50, %v425_v54  ;;  %v179_v58 = vmul.u32 %v172_v47, %v163_v56 }
 0x117   :  { %v422_v52 = vmul.u32.u64.low %v172_v47, %v171_v51  ;;  %v423_v53 = vmul.u32.u64.high %v172_v47, %v171_v51, %v422_v52 }
 0x118   :  { %v182_v57 = vadd.s32 1, %v426_v55 }
 0x119   :  { %vm181_vm7 = vc.u32 %v423_v53, %v425_v54  ;;  %v180_v7 = vadd.s32 %v425_v54, %v423_v53 }
 0x11a   :  { %v183_v59 = vsel %vm181_vm7, %v182_v57, %v426_v55 }
 0x11b   :  { %v184_v60 = vadd.s32 %v183_v59, %v179_v58 }
 0x11d   :  { %v185_v61 = vadd.s32 536870912, %v184_v60 }
 0x11f   :  { %v186_v62 = vshrl.u32 %v185_v61, 30 }
 0x121   :  { %v187_v63 = vshll.u32 %v186_v62, 30  ;;  %v210_v20 = vsub.s32 4, %v186_v62 }
 0x123   :  { %v188_v0 = vsub.s32 %v184_v60, %v187_v63  ;;  %v211_v23 = vsel %vm126_vm9, %v210_v20, %v186_v62 }
 0x124   :  { %v213_v25 = vsel %vm125_vm10, 0, %v211_v23 }
 0x125   :  { %v190_v1 = vsub.s32 0, %v188_v0  ;;  %v217_v26 = vadd.s32 3, %v213_v25 }
 0x127   :  { %v250_v2 = vmin.u32 %v190_v1, %v188_v0  ;;  %v218_v27 = vand.u32 3, %v217_v26 }
 0x129   :  { %v192_v3 = vclz %v250_v2  ;;  %vm223_vm11 = vcmp.eq.s32.totalorder %v218_v27, 2  ;;  %vm220_vm12 = vcmp.eq.s32.totalorder %v218_v27, 0  ;;  %vm219_vm13 = vcmp.lt.s32.totalorder %v218_v27, 2 }
 0x12b   :  { %v251_v4 = vadd.s32 4294967294, %v192_v3 }
 0x12d   :  { %vm252_vm8 = vcmp.lt.s32.totalorder %v251_v4, 0 }
 0x12e   :  { %v195_v6 = vsel %vm252_vm8, 0, %v251_v4 }
 0x12f   :  { %v196_v8 = vsub.s32 32, %v195_v6  ;;  %v200_v9 = vsub.s32 4294967266, %v195_v6  ;;  %v197_v10 = vshll.u32 %v188_v0, %v195_v6 }
 0x131   :  { %v198_v12 = vshrl.u32 %v180_v7, %v196_v8  ;;  %v201_v13 = vadd.s32 127, %v200_v9 }
 0x133   :  { %v199_v14 = vor.u32 %v198_v12, %v197_v10  ;;  %v202_v15 = vshll.u32 %v201_v13, 23 }
 0x135   :  { %v203_v16 = vor.u32 4788187, %v202_v15  ;;  %v206_v18 = vcvt.s32.f32 %v199_v14 }
 0x137   :  { %v204_v17 = vand.u32 2147483647, %v203_v16 }
 0x139   :  { %v207_v19 = vmul.f32 %v206_v18, %v204_v17 }
 0x13b   :  { %v208_v21 = vxor.u32 2147483648, %v207_v19 }
 0x13d   :  { %v209_v22 = vsel %vm126_vm9, %v208_v21, %v207_v19 }
 0x13e   :  { %v212_v24 = vsel %vm125_vm10, %v416_v5, %v209_v22 }
 0x13f   :  { %277 = vcosq.f32 %v212_v24 }
 0x140   :  { %279 = vsinq.f32 %v212_v24 }
 0x149   :  { %v278_v28 = vpop.eup %277 }
 0x14a   :  { %v280_v29 = vpop.eup %279  ;;  %v224_v30 = vxor.u32 2147483648, %v278_v28 }
 0x14b   :  { %v221_v31 = vxor.u32 2147483648, %v280_v29 }
 0x14c   :  { %v225_v32 = vsel %vm223_vm11, %v224_v30, %v280_v29 }
 0x14d   :  { %v222_v33 = vsel %vm220_vm12, %v278_v28, %v221_v31 }
 0x14e   :  { %v226_v11 = vsel %vm219_vm13, %v222_v33, %v225_v32 }
 0x14f   :  { %v227_v34 = vsel %vm216_vm14, nan, %v226_v11 }
 0x150   :  { %228 = vst [vmem:[#allocation7] sm:$0xff] %v227_v34 }
 0x151   :  { %233 = vsyncadd [#allocation4], 64  ;;  %s365_s1 = smov [#allocation7]  }
 0x152   :  { %s234_s2 = sshll.u32 %s365_s1, 4  ;;  %s235_s2 = int_to_ptr.vmem [resolvable:$true] %s234_s2 }
 0x153   :  { %s325_s13 = scalar_lea.vmem %s235_s2, 64  ;;  %s329_s14 = scalar_lea.vmem %s235_s2, 128 }
 0x154   :  { %p326_p2 = scmp.ne.s32.totalorder %s235_s2, %s325_s13  ;;  %p330_p3 = scmp.lt.s32.totalorder %s235_s2, %s235_s2 }
 0x155   :  { %p331_p4 = scmp.lt.s32.totalorder %s329_s14, %s325_s13 }
 0x157   :  { %p332_p5 = por %p331_p4, %p330_p3 }
 0x159   :  { %p333_p6 = pnand %p332_p5, %p326_p2 }
 0x15b   :  { %336 = shalt.err (!%p333_p6)
}
 0x15c   :  { %s337_s17 = scalar_lea.hbm %s455_s3, 64 }
 0x15d   :  { %p338_p7 = scmp.ne.s32.totalorder %s455_s3, %s337_s17  ;;  %p341_p8 = scmp.lt.u32.totalorder %s337_s17, %s455_s3 }
 0x15f   :  { %p343_p9 = pnand %p341_p8, %p338_p7 }
 0x161   :  { %346 = shalt.err (!%p343_p9)
}
 0x162   :  { %240 = dma.vmem_to_hbm [thread:$0]  %s235_s2, 64, %s455_s3, [#allocation4], %s354_s23, %s354_s23, %s355_s24  }
 0x163   :  { %351 = dma.done.wait [#allocation4], 128  }
 0x164   :  { %352 = vsyncadd [#allocation4], 4294967168 }
 0x165   :  { %244 = vsyncpa [#allocation3], 1 }
 0x166   :  { %245 = vsyncpa [#allocation6], 1 }
 0x167   :  { %246 = vsyncpa [#allocation4], 1 }

</bundles_post_ra>
